<compile_context>
chip_gen: v7x
topology: tpu7x:2x2x1
jax: 0.10.0
libtpu: 0.0.40
codegen_flags: <defaults>
</compile_context>

<pallas_src>
import jax
import jax.numpy as jnp
from jax import lax
from jax.experimental import pallas as pl
from jax.experimental.pallas import tpu as pltpu

_TB = 512  # batch-tile rows for the tiled path (>=512 f32 rows per HBM roofline sweep)


def _linear_add_kernel(x_ref, wb_ref, o1_ref, out_ref):
    in_f = x_ref.shape[-1]
    # v1 = x @ W^T + b.  wb packs W^T in rows [0:IN) and bias in row IN.
    v1 = lax.dot_general(
        x_ref[...],                # (B, IN)
        wb_ref[:in_f, :],          # (IN, OUT)  == W^T, no relayout needed
        dimension_numbers=(((1,), (0,)), ((), ())),
        preferred_element_type=jnp.float32,
    )                              # (B, OUT), f32
    bias_row = wb_ref[in_f:in_f + 1, :]          # (1, OUT)
    out_ref[...] = (v1 + bias_row + o1_ref[...]).astype(out_ref.dtype)


def pack_weight_bias(weight, bias):
    """Prepare the (IN+1, OUT) [W^T ; b] slab once, outside the per-call hot path."""
    w_t = weight.T.astype(jnp.float32)                 # (IN, OUT)
    b_row = bias.reshape(1, -1).astype(jnp.float32)    # (1, OUT)
    return jnp.concatenate([w_t, b_row], axis=0)       # (IN+1, OUT)


def linear_add(x2, o1, wb):
    """v2 = x2 @ W^T + b + o1, with wb = pack_weight_bias(W, b)."""
    B, IN = x2.shape
    OUT = wb.shape[1]
    assert wb.shape[0] == IN + 1
    assert o1.shape == (B, OUT)

    if B <= _TB:
        # Gridless single-shot: whole arrays in VMEM, no pipelining machinery.
        vmem = pl.BlockSpec(memory_space=pltpu.MemorySpace.VMEM)
        return pl.pallas_call(
            _linear_add_kernel,
            out_shape=jax.ShapeDtypeStruct((B, OUT), x2.dtype),
            in_specs=[vmem, vmem, vmem],   # x2, wb slab, o1
            out_specs=vmem,
        )(x2, wb, o1)

    # Batched path: tile only the batch axis; weight/bias slab resident.
    grid = (pl.cdiv(B, _TB),)
    return pl.pallas_call(
        _linear_add_kernel,
        out_shape=jax.ShapeDtypeStruct((B, OUT), x2.dtype),
        grid_spec=pltpu.PrefetchScalarGridSpec(
            num_scalar_prefetch=0,
            grid=grid,
            in_specs=[
                pl.BlockSpec((_TB, IN), lambda i: (i, 0)),        # x rows
                pl.BlockSpec((IN + 1, OUT), lambda i: (0, 0)),    # whole slab, resident
                pl.BlockSpec((_TB, OUT), lambda i: (i, 0)),       # o1 rows
            ],
            out_specs=pl.BlockSpec((_TB, OUT), lambda i: (i, 0)),
        ),
        compiler_params=pltpu.CompilerParams(
            dimension_semantics=("parallel",)),    # use v7x's 2nd TensorCore
    )(x2, wb, o1)


if __name__ == "__main__":
    key = jax.random.PRNGKey(0)
    k_x, k_o, k_w, k_b, k_xb, k_ob = jax.random.split(key, 6)

    # --- Module-faithful shapes: Linear(8, 8); x2 (1, 8), o1 (1, 8) ---
    x2 = jax.random.normal(k_x, (1, 8), dtype=jnp.float32)
    o1 = jax.random.normal(k_o, (1, 8), dtype=jnp.float32)
    bound = 1.0 / jnp.sqrt(8.0)
    weight = jax.random.uniform(k_w, (8, 8), minval=-bound, maxval=bound, dtype=jnp.float32)
    bias = jax.random.uniform(k_b, (8,), minval=-bound, maxval=bound, dtype=jnp.float32)

    wb = pack_weight_bias(weight, bias)   # prepared once, outside the hot path

    ref = x2 @ weight.T + bias + o1
    out = jax.block_until_ready(linear_add(x2, o1, wb))
    assert jnp.allclose(out, ref, atol=1e-5, rtol=1e-5), "mismatch vs reference (B=1)"

    # --- Batched variant: exercises the tiled grid / 'parallel' batch axis ---
    Bb = 1024
    xb = jax.random.normal(k_xb, (Bb, 8), dtype=jnp.float32)
    ob = jax.random.normal(k_ob, (Bb, 8), dtype=jnp.float32)
    refb = xb @ weight.T + bias + ob
    outb = jax.block_until_ready(linear_add(xb, ob, wb))
    assert jnp.allclose(outb, refb, atol=1e-4, rtol=1e-5), "mismatch vs reference (batched)"

    print("KERNEL_OK")
</pallas_src>

<mosaic_0001>
module attributes {stable_mosaic.version = 11 : i64} {
  func.func @_linear_add_kernel(%arg0: memref<1x8xf32, #tpu.memory_space<vmem>>, %arg1: memref<9x8xf32, #tpu.memory_space<vmem>>, %arg2: memref<1x8xf32, #tpu.memory_space<vmem>>, %arg3: memref<1x8xf32, #tpu.memory_space<vmem>>) attributes {dimension_semantics = [], scalar_prefetch = 0 : i64, scratch_operands = 0 : i64, tpu.core_type = #tpu.core_type<tc>} {
    %c0 = arith.constant 0 : index
    %c0_0 = arith.constant 0 : index
    %0 = vector.load %arg0[%c0, %c0_0] : memref<1x8xf32, #tpu.memory_space<vmem>>, vector<1x8xf32>
    %c0_1 = arith.constant 0 : index
    %c0_2 = arith.constant 0 : index
    %1 = vector.load %arg1[%c0_1, %c0_2] : memref<9x8xf32, #tpu.memory_space<vmem>>, vector<8x8xf32>
    %cst = arith.constant dense<0.000000e+00> : vector<1x8xf32>
    %2 = tpu.matmul %0, %1, %cst {dimension_numbers = #tpu.dot_dimension_numbers<[1], [0], [0], [1], [0, 0, 1, 1], [], []>} : vector<1x8xf32>, vector<8x8xf32>, vector<1x8xf32> -> vector<1x8xf32>
    %c8 = arith.constant 8 : index
    %c0_3 = arith.constant 0 : index
    %3 = vector.load %arg1[%c8, %c0_3] : memref<9x8xf32, #tpu.memory_space<vmem>>, vector<1x8xf32>
    %4 = arith.addf %2, %3 : vector<1x8xf32>
    %c0_4 = arith.constant 0 : index
    %c0_5 = arith.constant 0 : index
    %5 = vector.load %arg2[%c0_4, %c0_5] : memref<1x8xf32, #tpu.memory_space<vmem>>, vector<1x8xf32>
    %6 = arith.addf %4, %5 : vector<1x8xf32>
    %c0_6 = arith.constant 0 : index
    %c0_7 = arith.constant 0 : index
    %7 = vector.load %arg3[%c0_6, %c0_7] : memref<1x8xf32, #tpu.memory_space<vmem>>, vector<1x8xf32>
    tpu.vector_store %arg3[%c0_6, %c0_7], %6 {strides = array<i32>} : memref<1x8xf32, #tpu.memory_space<vmem>>, vector<1x8xf32>,
    return
  }
}

</mosaic_0001>

<bundles_post_ra>
// kernel: tpu_custom_call.1
= control target key start
LH: loop header
LB: loop body
LE: loop exit
PB: predicated region body
PF: predicated region fallthrough
CT: control target
= control target key end

     0   :  { %vm18_vm0 = vcmask 64512   ;;  %v145_v2 = vmov 0.0   ;;  %vm146_vm1 = vmmov 0   ;;  %s192_s0 = inlined_call_operand.vmem [shape: f32[1,8], index: 0, kind: input, shape index: {}]   ;;  %s193_s1 = inlined_call_operand.vmem [shape: f32[9,8], index: 1, kind: input, shape index: {}]   ;;  %s194_s2 = inlined_call_operand.vmem [shape: f32[1,8], index: 2, kind: input, shape index: {}]   ;;  %s195_s3 = inlined_call_operand.hbm [shape: f32[1,8], index: 3, kind: output, shape index: {}]  }
   0x1   :  { %v16_v0 = vld [vmem:[%s193_s1] sm:$0xff]  ;;  %113 = vmatprep.subr.mxu0 %v145_v2  ;;  %115 = vmatprep.mubr.msk.f32.mxu0 %vm146_vm1, %v145_v2 }
   0x2   :  { %v15_v1 = vld [vmem:[%s192_s0] sm:$0x1] }
   0x3   :  { %8 = vsyncpa [#allocation3], 0  ;;  %114 = vmatpush3.msra.mxu0 %v16_v0  ;;  %v17_v3 = vld [vmem:[%s193_s1 + $0x8] sm:$0x1]  ;;  %v92_v5 = vld [vmem:[%s194_s2] sm:$0x1] }
   0x4   :  { %116 = vmatmul.mubr.msk.f32.vlgmr.msra.gmra.mrb[0].mxu0 %vm18_vm0, %v15_v1  ;;  %s147_s20 = smov [#allocation2]   ;;  %vm94_vm2 = vcmask 57344  }
   0x5   :  { %s102_s21 = sshll.u32 %s147_s20, 4  ;;  %s103_s21 = int_to_ptr.vmem [resolvable:$true] %s102_s21 }
   0x6   :  { %s121_s0 = scalar_lea.vmem %s103_s21, 16  ;;  %s125_s22 = scalar_lea.vmem %s103_s21, 32 }
   0x7   :  { %p122_p0 = scmp.ne.s32.totalorder %s103_s21, %s121_s0  ;;  %p126_p1 = scmp.lt.s32.totalorder %s103_s21, %s103_s21 }
   0x8   :  { %p127_p2 = scmp.lt.s32.totalorder %s125_s22, %s121_s0 }
   0xa   :  { %p128_p3 = por %p127_p2, %p126_p1 }
   0xc   :  { %p129_p4 = pnand %p128_p3, %p122_p0 }
  0xd7   :  { %v88_v4 = vpop.f32.mrb[0].mxu0 }
  0xd8   :  { %v89_v6 = vadd.f32 %v88_v4, %v17_v3  ;;  %v117_v7 = vpop.f32.mrb[1].mxu0 }
  0xda   :  { %v93_v8 = vadd.f32 %v92_v5, %v89_v6 }
  0xdc   :  { %95 = vst.msk [vmem:[#allocation2] sm:$0x1] %vm94_vm2, %v93_v8 }
  0xdd   :  { %132 = shalt.err (!%p129_p4)
}
  0xde   :  { %s133_s2 = scalar_lea.hbm %s195_s3, 16 }
  0xdf   :  { %p134_p5 = scmp.ne.s32.totalorder %s195_s3, %s133_s2  ;;  %p137_p6 = scmp.lt.u32.totalorder %s133_s2, %s195_s3 }
  0xe1   :  { %p139_p7 = pnand %p137_p6, %p134_p5 }
  0xe3   :  { %142 = shalt.err (!%p139_p7)
}
  0xe4   :  { %105 = dma.vmem_to_hbm [thread:$0]  %s103_s21, 16, %s195_s3, [#allocation3]  }
  0xe5   :  { %143 = dma.done.wait [#allocation3], 16  }
  0xe6   :  { %144 = vsyncadd [#allocation3], 4294967280 }
  0xe7   :  { %109 = vsyncpa [#allocation3], 1 }

</bundles_post_ra>
